<compile_context>
chip_gen: v7x
topology: tpu7x:2x2x1
jax: 0.10.0
libtpu: 0.0.40
codegen_flags: <defaults>
</compile_context>

<pallas_src>
import functools

import jax
import jax.numpy as jnp
from jax.experimental import pallas as pl
from jax.experimental.pallas import tpu as pltpu


def _soft_prompt_kernel(prompts_ref, emb_ref, out_ref, sem_ref,
                        *, p_flat, s_flat, b, tb, n_tiles):
    # prompts_ref: (1, p_flat)        raw HBM ref (memory_space=ANY)
    # emb_ref:     (B, s_flat)        raw HBM ref (memory_space=ANY)
    # out_ref:     (B, p_flat+s_flat) raw HBM ref (memory_space=ANY)
    # sem_ref:     (2,)               DMA semaphores (0: embedded, 1: prompts)
    i = pl.program_id(0)            # batch-tile index
    b0 = i * tb
    rows_last = b - (n_tiles - 1) * tb   # static: rows in the last batch tile

    def copy_tile(rows):            # rows is a static Python int
        copies = []
        # --- embedded rows: one large HBM->HBM DMA for the whole tile --------
        if s_flat > 0:
            cp = pltpu.make_async_copy(
                emb_ref.at[pl.ds(b0, rows), :],
                out_ref.at[pl.ds(b0, rows), pl.ds(p_flat, s_flat)],
                sem_ref.at[0])
            cp.start()
            copies.append(cp)
        # --- prompt rows: one small HBM->HBM DMA per batch row ---------------
        if p_flat > 0:
            for r in range(rows):
                cp = pltpu.make_async_copy(
                    prompts_ref,
                    out_ref.at[pl.ds(b0 + r, 1), pl.ds(0, p_flat)],
                    sem_ref.at[1])
                cp.start()
                copies.append(cp)
        # All transfers of this step are in flight before the first wait.
        for cp in copies:
            cp.wait()

    if rows_last == tb:
        # tb divides B: single full-tile path.
        copy_tile(tb)
    else:
        @pl.when(i < n_tiles - 1)
        def _():
            copy_tile(tb)

        @pl.when(i == n_tiles - 1)
        def _():
            copy_tile(rows_last)    # statically-sized tail tile


def soft_prompting_forward(prompts: jax.Array, embedded: jax.Array) -> jax.Array:
    """prompts: (p, E), embedded: (B, S, E) -> (B, p+S, E) == cat(repeat(prompts), embedded, dim=1)."""
    p, e = prompts.shape
    b, s, e2 = embedded.shape
    assert e == e2, "embedding dims must match"
    dtype = embedded.dtype
    prompts = prompts.astype(dtype)          # output dtype follows the activations

    # Degenerate cases: no kernel needed.
    if p == 0:
        return embedded
    if s == 0:
        return jnp.broadcast_to(prompts[None, :, :], (b, p, e))

    p_flat = p * e
    s_flat = s * e
    out_flat = p_flat + s_flat

    # Flatten trailing dims so every DMA moves contiguous per-row bursts.
    emb2d = embedded.reshape(b, s_flat)
    prompts2d = prompts.reshape(1, p_flat)

    # Grid: a handful of batch tiles — at least 2 when B >= 2 so v7x's two
    # TensorCores both get work, few enough that each embedded DMA stays large.
    target_tiles = min(b, 8)
    tb = pl.cdiv(b, target_tiles)
    tb = min(tb, 512)                        # bound outstanding prompt DMAs / step
    n_tiles = pl.cdiv(b, tb)

    itemsize = jnp.dtype(dtype).itemsize
    cost = pl.CostEstimate(
        flops=0,
        transcendentals=0,
        bytes_accessed=(b * s_flat + b * p_flat + b * out_flat) * itemsize)

    kernel = functools.partial(_soft_prompt_kernel,
                               p_flat=p_flat, s_flat=s_flat,
                               b=b, tb=tb, n_tiles=n_tiles)

    out2d = pl.pallas_call(
        kernel,
        out_shape=jax.ShapeDtypeStruct((b, out_flat), dtype),
        grid_spec=pltpu.PrefetchScalarGridSpec(
            num_scalar_prefetch=0,
            grid=(n_tiles,),
            in_specs=[
                pl.BlockSpec(memory_space=pl.ANY),   # prompts, raw HBM
                pl.BlockSpec(memory_space=pl.ANY),   # embedded, raw HBM
            ],
            out_specs=pl.BlockSpec(memory_space=pl.ANY),
            scratch_shapes=[pltpu.SemaphoreType.DMA((2,))],
        ),
        compiler_params=pltpu.CompilerParams(
            # Every grid point writes a disjoint output slab -> parallel, lets
            # Mosaic shard batch tiles across both TensorCores on v7x.
            dimension_semantics=("parallel",),
        ),
        cost_estimate=cost,
    )(prompts2d, emb2d)

    return out2d.reshape(b, p + s, e)


if __name__ == "__main__":
    # Small shapes consistent with the module: p prompt tokens, e embedding dim,
    # embedded input (B, S, E).
    P, E = 8, 32
    B, S = 2, 8

    key = jax.random.PRNGKey(0)
    k_prompts, k_emb = jax.random.split(key)

    prompts = jax.random.normal(k_prompts, (P, E), dtype=jnp.float32)
    embedded = jax.random.normal(k_emb, (B, S, E), dtype=jnp.float32)

    out = soft_prompting_forward(prompts, embedded)
    out = jax.block_until_ready(out)

    # Reference: broadcast prompts over batch and concat along the sequence axis.
    ref = jnp.concatenate(
        [jnp.broadcast_to(prompts[None, :, :], (B, P, E)), embedded], axis=1
    )
    assert out.shape == (B, P + S, E)
    assert jnp.allclose(out, ref), "mismatch vs reference"

    print("KERNEL_OK")
</pallas_src>

<mosaic_0001>
module attributes {stable_mosaic.version = 11 : i64} {
  func.func @_soft_prompt_kernel(%arg0: i32, %arg1: memref<1x256xf32, #tpu.memory_space<any>>, %arg2: memref<2x256xf32, #tpu.memory_space<any>>, %arg3: memref<2x512xf32, #tpu.memory_space<any>>, %arg4: memref<2x!tpu.dma_semaphore, #tpu.memory_space<semaphore_mem>>) attributes {dimension_semantics = [#tpu.dimension_semantics<parallel>], iteration_bounds = array<i64: 2>, scalar_prefetch = 0 : i64, scratch_operands = 1 : i64, tpu.core_type = #tpu.core_type<tc>, window_params = [{}, {}, {}]} {
    %c1_i32 = arith.constant 1 : i32
    %0 = arith.muli %arg0, %c1_i32 : i32
    %c0_i32 = arith.constant 0 : i32
    %c0_i32_0 = arith.constant 0 : i32
    %1 = tpu.memref_slice %arg2[%0, %c0_i32_0] : memref<2x256xf32, #tpu.memory_space<any>> -> memref<1x256xf32, #tpu.memory_space<any>>
    %c256_i32 = arith.constant 256 : i32
    %2 = tpu.memref_slice %arg3[%0, %c256_i32] : memref<2x512xf32, #tpu.memory_space<any>> -> memref<1x256xf32, #tpu.memory_space<any>>
    %3 = tpu.memref_slice %arg4[%c0_i32] : memref<2x!tpu.dma_semaphore, #tpu.memory_space<semaphore_mem>> -> memref<1x!tpu.dma_semaphore, #tpu.memory_space<semaphore_mem>>
    %4 = tpu.memref_squeeze %3 : memref<1x!tpu.dma_semaphore, #tpu.memory_space<semaphore_mem>> -> memref<!tpu.dma_semaphore, #tpu.memory_space<semaphore_mem>>
    tpu.enqueue_dma source(%1 : memref<1x256xf32, #tpu.memory_space<any>>) target(%2 : memref<1x256xf32, #tpu.memory_space<any>>) target_semaphore(%4 : memref<!tpu.dma_semaphore, #tpu.memory_space<semaphore_mem>>)
    %c0_i32_1 = arith.constant 0 : i32
    %5 = arith.addi %0, %c0_i32_1 : i32
    %c1_i32_2 = arith.constant 1 : i32
    %c0_i32_3 = arith.constant 0 : i32
    %6 = tpu.memref_slice %arg3[%5, %c0_i32_3] : memref<2x512xf32, #tpu.memory_space<any>> -> memref<1x256xf32, #tpu.memory_space<any>>
    %7 = tpu.memref_slice %arg4[%c1_i32_2] : memref<2x!tpu.dma_semaphore, #tpu.memory_space<semaphore_mem>> -> memref<1x!tpu.dma_semaphore, #tpu.memory_space<semaphore_mem>>
    %8 = tpu.memref_squeeze %7 : memref<1x!tpu.dma_semaphore, #tpu.memory_space<semaphore_mem>> -> memref<!tpu.dma_semaphore, #tpu.memory_space<semaphore_mem>>
    tpu.enqueue_dma source(%arg1 : memref<1x256xf32, #tpu.memory_space<any>>) target(%6 : memref<1x256xf32, #tpu.memory_space<any>>) target_semaphore(%8 : memref<!tpu.dma_semaphore, #tpu.memory_space<semaphore_mem>>)
    %c0_i32_4 = arith.constant 0 : i32
    %c0_i32_5 = arith.constant 0 : i32
    %9 = tpu.memref_slice %arg2[%0, %c0_i32_5] : memref<2x256xf32, #tpu.memory_space<any>> -> memref<1x256xf32, #tpu.memory_space<any>>
    %c256_i32_6 = arith.constant 256 : i32
    %10 = tpu.memref_slice %arg3[%0, %c256_i32_6] : memref<2x512xf32, #tpu.memory_space<any>> -> memref<1x256xf32, #tpu.memory_space<any>>
    %11 = tpu.memref_slice %arg4[%c0_i32_4] : memref<2x!tpu.dma_semaphore, #tpu.memory_space<semaphore_mem>> -> memref<1x!tpu.dma_semaphore, #tpu.memory_space<semaphore_mem>>
    %12 = tpu.memref_squeeze %11 : memref<1x!tpu.dma_semaphore, #tpu.memory_space<semaphore_mem>> -> memref<!tpu.dma_semaphore, #tpu.memory_space<semaphore_mem>>
    tpu.wait_dma2 semaphore(%12 : memref<!tpu.dma_semaphore, #tpu.memory_space<semaphore_mem>>) src(%9 : memref<1x256xf32, #tpu.memory_space<any>>) dst(%10 : memref<1x256xf32, #tpu.memory_space<any>>)
    %c1_i32_7 = arith.constant 1 : i32
    %c0_i32_8 = arith.constant 0 : i32
    %13 = tpu.memref_slice %arg3[%5, %c0_i32_8] : memref<2x512xf32, #tpu.memory_space<any>> -> memref<1x256xf32, #tpu.memory_space<any>>
    %14 = tpu.memref_slice %arg4[%c1_i32_7] : memref<2x!tpu.dma_semaphore, #tpu.memory_space<semaphore_mem>> -> memref<1x!tpu.dma_semaphore, #tpu.memory_space<semaphore_mem>>
    %15 = tpu.memref_squeeze %14 : memref<1x!tpu.dma_semaphore, #tpu.memory_space<semaphore_mem>> -> memref<!tpu.dma_semaphore, #tpu.memory_space<semaphore_mem>>
    tpu.wait_dma2 semaphore(%15 : memref<!tpu.dma_semaphore, #tpu.memory_space<semaphore_mem>>) src(%arg1 : memref<1x256xf32, #tpu.memory_space<any>>) dst(%13 : memref<1x256xf32, #tpu.memory_space<any>>)
    return
  }
}

</mosaic_0001>

<bundles_post_ra>
// kernel: tpu_custom_call.1
= control target key start
LH: loop header
LB: loop body
LE: loop exit
PB: predicated region body
PF: predicated region fallthrough
CT: control target
= control target key end

     0   :  { %s161_s9 = smov 0   ;;  %s180_s0 = inlined_call_operand.hbm [shape: f32[1,256], index: 0, kind: input, shape index: {}]   ;;  %s181_s1 = inlined_call_operand.hbm [shape: f32[2,256], index: 1, kind: input, shape index: {}]   ;;  %s182_s2 = inlined_call_operand.hbm [shape: f32[2,512], index: 2, kind: output, shape index: {}]  }
   0x1 LB: > { %s14_s10 = sshrl.u32 %s136_s9, 1  ;;  %s15_s11 = sand.u32 1, %s136_s9   ;;  %s136_s9 = sphi %s161_s9, %s12_s9  }
   0x2   : > { %s102_s12 = sshll.u32 %s14_s10, 2  ;;  %s104_s13 = sshll.u32 %s14_s10, 3 }
   0x3   : > { %s17_s14 = sadd.s32 %s102_s12, %s15_s11  ;;  %s21_s15 = sadd.s32 %s104_s13, %s15_s11 }
   0x4   : > { %s103_s16 = sshll.u32 %s17_s14, 4  ;;  %s106_s17 = sshll.u32 %s21_s15, 4 }
   0x5   : > { %s19_s20 = scalar_lea.hbm %s181_s1, %s103_s16  ;;  %s91_s23 = scalar_lea.hbm %s182_s2, %s106_s17 }
   0x6   : > { %s92_s24 = scalar_lea.hbm %s91_s23, 64  ;;  %s138_s25 = smov 32  }
   0x7   : > { %37 = sst [smem:[#allocation4]] %s138_s25  ;;  %s139_s26 = smov 1  }
   0x8   : > { %39 = sst [smem:[#allocation4 + $0x1]] %s138_s25  ;;  %s140_s27 = smov [#allocation2]  }
   0x9   : > { %41 = sst [smem:[#allocation4 + $0x2]] %s139_s26  ;;  %s141_s28 = smov [#allocation3]  }
   0xa   : > { %s142_s29 = smov 0   ;;  %s143_s30 = smov 16  }
   0xb   : > { %43 = dma.general %s19_s20, 32, %s92_s24, %s140_s27, %s141_s28, [#allocation4], %s142_s29, 0  }
   0xc   : > { %59 = sst [smem:[#allocation6]] %s143_s30  ;;  %s144_s3 = smov [#allocation2 + $0x1]  }
   0xd   : > { %61 = sst [smem:[#allocation6 + $0x1]] %s138_s25  ;;  %s145_s4 = smov [#allocation5]  }
   0xe   : > { %63 = sst [smem:[#allocation6 + $0x2]] %s139_s26 }
   0xf   : > { %65 = dma.general %s180_s0, 32, %s91_s23, %s144_s3, %s145_s4, [#allocation6], %s142_s29, 0  }
  0x10   : > { %130 = dma.done.wait [#allocation2], 32 }
  0x11   : > { %131 = vsyncadd [#allocation2], 4294967264 }
  0x12   : > { %132 = dma.done.wait [#allocation2 + $0x1], 32 }
  0x13   : > { %133 = vsyncadd [#allocation2 + $0x1], 4294967264  ;;  %s12_s9 = sadd.s32 1, %s136_s9  }
  0x14   : > { %p9_p0 = scmp.ge.s32.totalorder %s12_s9, 2  }
  0x16   :  { %11 = sbr.rel (!%p9_p0) target bundleno = 1 (0x1), region = 28 }
  0x1d   :  { %71 = vsyncmov [#allocation2] }
  0x20   :  { %s72_s7 = vpop.sfrf %71 }
  0x21   :  { %p108_p1 = scmp.ne.s32.totalorder %s72_s7, 0 }
  0x23   :  { %76 = shalt.err (%p108_p1)  }
  0x24   :  { %78 = vsyncmov [#allocation2 + $0x1] }
  0x27   :  { %s79_s8 = vpop.sfrf %78 }
  0x28   :  { %p109_p2 = scmp.ne.s32.totalorder %s79_s8, 0 }
  0x2a   :  { %83 = shalt.err (%p109_p2)  }

</bundles_post_ra>
